<compile_context>
chip_gen: v7x
topology: tpu7x:2x2x1
jax: 0.10.0
libtpu: 0.0.40
codegen_flags: <defaults>
</compile_context>

<pallas_src>
import math

import jax
import jax.numpy as jnp
from jax import lax
from jax.experimental import pallas as pl
from jax.experimental.pallas import tpu as pltpu


_LANE = 128


def _cdiv(a, b):
    return -(-a // b)


def _round_up(v, m):
    return _cdiv(v, m) * m


def _pad_to(a, shape):
    pads = [(0, s - d) for d, s in zip(a.shape, shape)]
    if any(hi for _, hi in pads):
        a = jnp.pad(a, pads)
    return a


def _vmem_budget_bytes():
    """(tile-search budget, scoped-VMEM limit) derived from the real chip."""
    try:
        phys = int(pltpu.get_tpu_info().vmem_capacity_bytes)
    except Exception:  # not queryable: assume the smallest (v7x, 64 MiB) VMEM
        phys = 64 * 1024 * 1024
    # Cap at 112 MiB so v5e/v6e (128 MiB) no longer strand ~32 MiB; v7x ~48 MiB.
    limit = max(32 * 1024 * 1024, min(phys - 16 * 1024 * 1024, 112 * 1024 * 1024))
    budget = limit - 6 * 1024 * 1024
    return budget, limit


def _make_fused_kernel(add_bias, compute_dtype):
    """support = x@W recomputed per step; out = lap @ support (+ bias).

    Used for whole-graph blocks (tm == N, bt packed batch elements) and for the
    B == 1 row-tiled mode (bt == 1, tm < N), where recomputing support per row
    tile keeps both grid axes 'parallel' (v7x megacore utilization).
    """

    def kernel(*refs):
        if add_bias:
            x_ref, lap_ref, w_ref, b_ref, o_ref = refs
        else:
            x_ref, lap_ref, w_ref, o_ref = refs
            b_ref = None

        bt, n, f_in = x_ref.shape
        f_out = w_ref.shape[-1]

        # First matmul: flatten the packed batch dim into one MXU matmul.
        # (Layout-free when bt == 1 or n is a multiple of the sublane grain;
        # otherwise the relayout is << the matmul itself.)
        x2d = x_ref[...].reshape(bt * n, f_in)
        s = jnp.dot(x2d, w_ref[...], preferred_element_type=jnp.float32)
        s = s.reshape(bt, n, f_out).astype(compute_dtype)

        lap_val = lap_ref[...]
        if lap_val.dtype != compute_dtype:
            lap_val = lap_val.astype(compute_dtype)

        # Second matmul: explicit batched dot_general -> pure MXU, no XLU transpose.
        out = lax.dot_general(
            lap_val, s,
            dimension_numbers=(((2,), (1,)), ((0,), (0,))),
            preferred_element_type=jnp.float32)
        if add_bias:
            out = out + b_ref[...].astype(jnp.float32)  # (1, F_out) broadcasts
        o_ref[...] = out.astype(o_ref.dtype)

    return kernel


def _make_cached_kernel(add_bias, compute_dtype):
    """Row-tiled lap/out with a per-batch-element cached support (B >= 2)."""

    def kernel(*refs):
        if add_bias:
            x_hbm, lap_ref, w_ref, b_ref, o_ref, xbuf, sup, dma_sem = refs
        else:
            x_hbm, lap_ref, w_ref, o_ref, xbuf, sup, dma_sem = refs
            b_ref = None

        b = pl.program_id(0)
        j = pl.program_id(1)

        # Once per batch element: pull its features into VMEM with a single
        # manual copy (reclaims the 2x buffer a streamed BlockSpec would use)
        # and cache support = x @ W for all row tiles of this batch element.
        @pl.when(j == 0)
        def _():
            cp = pltpu.make_async_copy(x_hbm.at[b], xbuf, dma_sem)
            cp.start()
            cp.wait()
            s = jnp.dot(xbuf[...], w_ref[...], preferred_element_type=jnp.float32)
            sup[...] = s.astype(sup.dtype)

        lap_val = lap_ref[...]
        if lap_val.dtype != compute_dtype:
            lap_val = lap_val.astype(compute_dtype)

        out = jnp.dot(lap_val, sup[...], preferred_element_type=jnp.float32)
        if add_bias:
            out = out + b_ref[...].astype(jnp.float32)
        o_ref[...] = out.astype(o_ref.dtype)

    return kernel


def batch_graph_convolution(x, lap, weight, bias=None, *,
                            row_tile=None, batch_tile=None, compute_dtype=None):
    """out[b] = lap[b] @ (x[b] @ weight) + bias   (bias may be None)."""
    B, N, F_in = x.shape
    F_in_w, F_out = weight.shape
    assert F_in_w == F_in
    assert lap.shape == (B, N, N)

    budget, vmem_limit = _vmem_budget_bytes()

    if compute_dtype is None:
        # Exact (f32) for f32 inputs; bf16 inputs stay bf16 so both MXU passes
        # run at full rate.  Pass bf16 explicitly to trade accuracy for MXU
        # rate on compute-bound f32 workloads (v6e/v7x).
        compute_dtype = jnp.promote_types(x.dtype, lap.dtype)
    compute_dtype = jnp.dtype(compute_dtype)
    out_dtype = x.dtype

    isz_x = jnp.dtype(x.dtype).itemsize
    isz_lap = jnp.dtype(lap.dtype).itemsize
    isz_w = jnp.dtype(weight.dtype).itemsize
    isz_out = jnp.dtype(out_dtype).itemsize
    isz_cd = compute_dtype.itemsize

    # Lane-dense feature padding for the tiny operands only.  lap / the N
    # dimension are never padded: lap blocks keep the full last dim and ragged
    # row tiles rely on Pallas' boundary masking.
    f_in_p = _round_up(F_in, _LANE)
    f_out_p = _round_up(F_out, _LANE)

    # dtype-aware sublane grain of the streamed operand: 8 f32 / 16 bf16 / 32 i8.
    grain = max(8, 32 // isz_lap)

    def est_fused(bt, tm):
        return (2 * bt * tm * N * isz_lap             # lap row tiles (2x buffered)
                + 2 * bt * N * f_in_p * isz_x         # x blocks
                + 2 * f_in_p * f_out_p * isz_w        # weight
                + 2 * bt * tm * f_out_p * isz_out     # out tiles
                + bt * N * f_out_p * max(4, isz_cd))  # live f32 support value

    def est_cached(tm, lap_buf=2):
        return (lap_buf * tm * N * isz_lap
                + N * f_in_p * isz_x                  # xbuf scratch (single copy)
                + 2 * f_in_p * f_out_p * isz_w
                + 2 * tm * f_out_p * isz_out
                + N * f_out_p * isz_cd                # cached support
                + N * f_out_p * 4)                    # f32 x@W intermediate at j==0

    # ---------------- choose row tile (tm) and batch packing (bt) -----------
    if row_tile is not None:
        tm = max(8, (min(int(row_tile), N) // 8) * 8)
    elif est_fused(1, N) <= budget:
        tm = N                                        # whole graph per step
    else:
        tm = None

    lap_buf = 2
    if tm == N:
        mode = "fused"
        bt = 1
        if batch_tile is not None:
            bt = max(1, min(int(batch_tile), B))
        else:
            best_cost = B                             # cost of bt = 1
            for cand in (128, 64, 32, 16, 8, 4, 2):
                if cand > B:
                    continue
                nb_c = _cdiv(B, cand)
                if B >= 2 and nb_c < 2:
                    continue                          # keep both v7x cores fed
                if est_fused(cand, N) > budget:
                    continue
                cost = nb_c * cand                    # padded batch work
                if cost < best_cost or (cost == best_cost and cand > bt):
                    bt, best_cost = cand, cost
    else:
        bt = 1
        if tm is None:
            tm = 32
            for cand in (2048, 1024, 512, 256, 128, 64, 32):
                if cand >= N or cand % grain:
                    continue
                fits = (est_cached(cand) if B >= 2 else est_fused(1, cand)) <= budget
                if fits:
                    tm = cand
                    break
            # TODO(synk): if even tm=32 does not fit (x/support rows alone exceed
            # VMEM for enormous N), add a contraction-tiled inner grid axis over N
            # with an f32 accumulator instead of leaning on the VMEM limit.
        mode = "cached" if B >= 2 else "fused"
        if mode == "cached" and est_cached(tm, 3) <= budget:
            lap_buf = 3                               # hide the j==0 x@W stall

    nb = _cdiv(B, bt)
    nj = _cdiv(N, tm)
    grid = (nb, nj)

    # ---------------- pad the small operands only ---------------------------
    x_p = _pad_to(x, (B, N, f_in_p))
    w_p = _pad_to(weight, (f_in_p, f_out_p))
    add_bias = bias is not None
    if add_bias:
        bias_p = _pad_to(bias.reshape(1, F_out), (1, f_out_p))

    def _lap_spec(block_shape):
        if lap_buf != 2 and hasattr(pl, "Buffered"):
            try:
                return pl.BlockSpec(block_shape, lambda b, j: (b, j, 0),
                                    pipeline_mode=pl.Buffered(lap_buf))
            except TypeError:
                pass  # older Pallas: fall back to default double buffering
        return pl.BlockSpec(block_shape, lambda b, j: (b, j, 0))

    if mode == "fused":
        kernel = _make_fused_kernel(add_bias, compute_dtype)
        in_specs = [
            pl.BlockSpec((bt, N, f_in_p), lambda b, j: (b, 0, 0)),
            _lap_spec((bt, tm, N)),
            pl.BlockSpec((f_in_p, f_out_p), lambda b, j: (0, 0)),
        ]
        operands = [x_p, lap, w_p]
        if add_bias:
            in_specs.append(pl.BlockSpec((1, f_out_p), lambda b, j: (0, 0)))
            operands.append(bias_p)
        out_spec = pl.BlockSpec((bt, tm, f_out_p), lambda b, j: (b, j, 0))
        scratch = []
        semantics = ("parallel", "parallel")          # no cross-step state
    else:
        kernel = _make_cached_kernel(add_bias, compute_dtype)
        in_specs = [
            pl.BlockSpec(memory_space=pl.ANY),        # x: manual single-copy DMA
            _lap_spec((None, tm, N)),
            pl.BlockSpec((f_in_p, f_out_p), lambda b, j: (0, 0)),
        ]
        operands = [x_p, lap, w_p]
        if add_bias:
            in_specs.append(pl.BlockSpec((1, f_out_p), lambda b, j: (0, 0)))
            operands.append(bias_p)
        out_spec = pl.BlockSpec((None, tm, f_out_p), lambda b, j: (b, j, 0))
        scratch = [
            pltpu.VMEM((N, f_in_p), x.dtype),         # xbuf (single buffer)
            pltpu.VMEM((N, f_out_p), compute_dtype),  # support cache
            pltpu.SemaphoreType.DMA(()),
        ]
        semantics = ("parallel", "arbitrary")         # support cached across j

    out_p = pl.pallas_call(
        kernel,
        out_shape=jax.ShapeDtypeStruct((B, N, f_out_p), out_dtype),
        grid_spec=pltpu.PrefetchScalarGridSpec(
            num_scalar_prefetch=0,
            grid=grid,
            in_specs=in_specs,
            out_specs=out_spec,
            scratch_shapes=scratch,
        ),
        compiler_params=pltpu.CompilerParams(
            dimension_semantics=semantics,
            vmem_limit_bytes=vmem_limit,
        ),
    )(*operands)

    if f_out_p != F_out:
        out_p = out_p[:, :, :F_out]
    return out_p


def xavier_uniform(key, shape, dtype=jnp.float32):
    fan_in, fan_out = shape
    bound = math.sqrt(6.0 / (fan_in + fan_out))
    return jax.random.uniform(key, shape, dtype=dtype, minval=-bound, maxval=bound)


def _reference(x, lap, w, b):
    out = jnp.einsum("bnm,bmf->bnf", lap, jnp.einsum("bni,io->bno", x, w))
    return out + b if b is not None else out


if __name__ == "__main__":
    key = jax.random.PRNGKey(0)
    k_x, k_lap, k_w, k_b = jax.random.split(key, 4)

    # ---- primary demo: small DeepInf-like shapes (fused whole-graph path) ----
    B, N, F_in, F_out = 2, 16, 32, 64
    x = jax.random.normal(k_x, (B, N, F_in), dtype=jnp.float32)
    lap = jax.random.normal(k_lap, (B, N, N), dtype=jnp.float32)
    weight = xavier_uniform(k_w, (F_in, F_out))          # module's xavier init
    bias = jnp.zeros((F_out,), dtype=jnp.float32)        # module's zero-bias init

    out = jax.block_until_ready(batch_graph_convolution(x, lap, weight, bias))
    assert out.shape == (B, N, F_out)
    ref = _reference(x, lap, weight, bias)
    assert jnp.allclose(out, ref, atol=1e-4, rtol=1e-4), float(jnp.max(jnp.abs(out - ref)))

    # ---- bias=None path -----------------------------------------------------
    out_nb = jax.block_until_ready(batch_graph_convolution(x, lap, weight, None))
    assert jnp.allclose(out_nb, _reference(x, lap, weight, None), atol=1e-4, rtol=1e-4)

    # ---- row-tiled cached path (B >= 2): unpadded lap, ragged last row tile,
    #      unaligned feature dims, manual x DMA, lap Buffered(3) -------------
    B2, N2, Fi2, Fo2 = 2, 72, 20, 40
    x2 = jax.random.normal(k_x, (B2, N2, Fi2), dtype=jnp.float32)
    lap2 = jax.random.normal(k_lap, (B2, N2, N2), dtype=jnp.float32)
    w2 = xavier_uniform(k_w, (Fi2, Fo2))
    b2 = 0.1 * jax.random.normal(k_b, (Fo2,), dtype=jnp.float32)
    out2 = jax.block_until_ready(
        batch_graph_convolution(x2, lap2, w2, b2, row_tile=32))
    ref2 = _reference(x2, lap2, w2, b2)
    assert jnp.allclose(out2, ref2, atol=1e-4, rtol=1e-4), float(jnp.max(jnp.abs(out2 - ref2)))

    # ---- row-tiled fused/recompute path (B == 1 -> both grid axes parallel) --
    out3 = jax.block_until_ready(
        batch_graph_convolution(x2[:1], lap2[:1], w2, b2, row_tile=32))
    ref3 = _reference(x2[:1], lap2[:1], w2, b2)
    assert jnp.allclose(out3, ref3, atol=1e-4, rtol=1e-4), float(jnp.max(jnp.abs(out3 - ref3)))

    # ---- batch-packed fused path (bt > 1 per grid step) ----------------------
    B4 = 4
    x4 = jax.random.normal(k_x, (B4, N, F_in), dtype=jnp.float32)
    lap4 = jax.random.normal(k_lap, (B4, N, N), dtype=jnp.float32)
    out4 = jax.block_until_ready(
        batch_graph_convolution(x4, lap4, weight, bias, batch_tile=2))
    ref4 = _reference(x4, lap4, weight, bias)
    assert jnp.allclose(out4, ref4, atol=1e-4, rtol=1e-4), float(jnp.max(jnp.abs(out4 - ref4)))

    print("KERNEL_OK")
</pallas_src>

<mosaic_0001>
module attributes {stable_mosaic.version = 11 : i64} {
  func.func @kernel(%arg0: i32, %arg1: i32, %arg2: memref<1x16x128xf32, #tpu.memory_space<vmem>>, %arg3: memref<1x16x16xf32, #tpu.memory_space<vmem>>, %arg4: memref<128x128xf32, #tpu.memory_space<vmem>>, %arg5: memref<1x128xf32, #tpu.memory_space<vmem>>, %arg6: memref<1x16x128xf32, #tpu.memory_space<vmem>>) attributes {dimension_semantics = [#tpu.dimension_semantics<parallel>, #tpu.dimension_semantics<parallel>], iteration_bounds = array<i64: 2, 1>, scalar_prefetch = 0 : i64, scratch_operands = 0 : i64, tpu.core_type = #tpu.core_type<tc>, window_params = [{transform_indices = @transform_0, window_bounds = array<i64: 1, 16, 128>}, {transform_indices = @transform_1, window_bounds = array<i64: 1, 16, 16>}, {pipeline_mode = #tpu.pipeline_mode<synchronous>, transform_indices = @transform_2, window_bounds = array<i64: 128, 128>}, {pipeline_mode = #tpu.pipeline_mode<synchronous>, transform_indices = @transform_3, window_bounds = array<i64: 1, 128>}, {transform_indices = @transform_4, window_bounds = array<i64: 1, 16, 128>}]} {
    %c0 = arith.constant 0 : index
    %c0_0 = arith.constant 0 : index
    %c0_1 = arith.constant 0 : index
    %0 = vector.load %arg2[%c0, %c0_0, %c0_1] : memref<1x16x128xf32, #tpu.memory_space<vmem>>, vector<1x16x128xf32>
    %1 = vector.shape_cast %0 : vector<1x16x128xf32> to vector<16x128xf32>
    %c0_2 = arith.constant 0 : index
    %c0_3 = arith.constant 0 : index
    %2 = vector.load %arg4[%c0_2, %c0_3] : memref<128x128xf32, #tpu.memory_space<vmem>>, vector<128x128xf32>
    %cst = arith.constant dense<0.000000e+00> : vector<16x128xf32>
    %3 = tpu.matmul %1, %2, %cst {dimension_numbers = #tpu.dot_dimension_numbers<[1], [0], [0], [1], [0, 0, 1, 1], [], []>} : vector<16x128xf32>, vector<128x128xf32>, vector<16x128xf32> -> vector<16x128xf32>
    %4 = vector.shape_cast %3 : vector<16x128xf32> to vector<1x16x128xf32>
    %c0_4 = arith.constant 0 : index
    %c0_5 = arith.constant 0 : index
    %c0_6 = arith.constant 0 : index
    %5 = vector.load %arg3[%c0_4, %c0_5, %c0_6] : memref<1x16x16xf32, #tpu.memory_space<vmem>>, vector<1x16x16xf32>
    %cst_7 = arith.constant dense<0.000000e+00> : vector<1x16x128xf32>
    %6 = tpu.matmul %5, %4, %cst_7 {dimension_numbers = #tpu.dot_dimension_numbers<[2], [1], [1], [2], [0, 0, 0, 1, 1, 2], [0], [0]>} : vector<1x16x16xf32>, vector<1x16x128xf32>, vector<1x16x128xf32> -> vector<1x16x128xf32>
    %c0_8 = arith.constant 0 : index
    %c0_9 = arith.constant 0 : index
    %7 = vector.load %arg5[%c0_8, %c0_9] : memref<1x128xf32, #tpu.memory_space<vmem>>, vector<1x128xf32>
    %8 = vector.shape_cast %7 : vector<1x128xf32> to vector<1x1x128xf32>
    %9 = vector.broadcast %8 : vector<1x1x128xf32> to vector<1x16x128xf32>
    %10 = arith.addf %6, %9 : vector<1x16x128xf32>
    %c0_10 = arith.constant 0 : index
    %c0_11 = arith.constant 0 : index
    %c0_12 = arith.constant 0 : index
    %11 = vector.load %arg6[%c0_10, %c0_11, %c0_12] : memref<1x16x128xf32, #tpu.memory_space<vmem>>, vector<1x16x128xf32>
    tpu.vector_store %arg6[%c0_10, %c0_11, %c0_12], %10 {strides = array<i32>} : memref<1x16x128xf32, #tpu.memory_space<vmem>>, vector<1x16x128xf32>,
    return
  }
  func.func @transform_0(%arg0: i32, %arg1: i32) -> (i32, i32, i32) {
    %c0_i32 = arith.constant 0 : i32
    %c0_i32_0 = arith.constant 0 : i32
    %c0_i32_1 = arith.constant 0 : i32
    return %arg0, %c0_i32, %c0_i32_0 : i32, i32, i32
  }
  func.func @transform_1(%arg0: i32, %arg1: i32) -> (i32, i32, i32) {
    %c0_i32 = arith.constant 0 : i32
    %c0_i32_0 = arith.constant 0 : i32
    return %arg0, %arg1, %c0_i32 : i32, i32, i32
  }
  func.func @transform_2(%arg0: i32, %arg1: i32) -> (i32, i32) {
    %c0_i32 = arith.constant 0 : i32
    %c0_i32_0 = arith.constant 0 : i32
    %c0_i32_1 = arith.constant 0 : i32
    return %c0_i32, %c0_i32_0 : i32, i32
  }
  func.func @transform_3(%arg0: i32, %arg1: i32) -> (i32, i32) {
    %c0_i32 = arith.constant 0 : i32
    %c0_i32_0 = arith.constant 0 : i32
    %c0_i32_1 = arith.constant 0 : i32
    return %c0_i32, %c0_i32_0 : i32, i32
  }
  func.func @transform_4(%arg0: i32, %arg1: i32) -> (i32, i32, i32) {
    %c0_i32 = arith.constant 0 : i32
    %c0_i32_0 = arith.constant 0 : i32
    return %arg0, %arg1, %c0_i32 : i32, i32, i32
  }
}

</mosaic_0001>

<bundles_post_ra>
// kernel: tpu_custom_call.1
= control target key start
LH: loop header
LB: loop body
LE: loop exit
PB: predicated region body
PF: predicated region fallthrough
CT: control target
= control target key end

     0   :  { %s1315_s0 = inlined_call_operand.hbm [shape: f32[2,16,128], index: 0, kind: input, shape index: {}]   ;;  %s1316_s1 = inlined_call_operand.hbm [shape: f32[2,16,16], index: 1, kind: input, shape index: {}]   ;;  %s1317_s2 = inlined_call_operand.hbm [shape: f32[128,128], index: 2, kind: input, shape index: {}]   ;;  %s1318_s3 = inlined_call_operand.vmem [shape: f32[1,128], index: 3, kind: input, shape index: {}]   ;;  %s1319_s4 = inlined_call_operand.hbm [shape: f32[2,16,128], index: 4, kind: output, shape index: {}]  }
   0x1   :  { %1328 = sst [smem:[#allocation14_spill]] %s1315_s0 }
   0x2   :  { %1329 = sst [smem:[#allocation15_spill]] %s1317_s2 }
   0x3   :  { %9 = vsyncpa [#allocation3], 0 }
   0x4   :  { %11 = vsyncpa [#allocation3 + $0x1], 0 }
   0x5   :  { %12 = vsyncpa [#allocation6], 0 }
   0x6   :  { %14 = vsyncpa [#allocation6 + $0x1], 0 }
   0x7   :  { %15 = vsyncpa [#allocation4], 0 }
   0x8   :  { %17 = vsyncpa [#allocation4 + $0x1], 0  ;;  %s1033_s15 = smov 0   ;;  %s1035_s16 = smov 0  }
   0x9   :  { %s1037_s17 = smov 0   ;;  %s1039_s18 = smov 0  }
   0xa   :  { %s1041_s19 = smov 0   ;;  %s1043_s20 = smov 0  }
   0xb LB: > { %s1064_s21 = sadd.s32 4294967295, %s998_s20   ;;  %s612_s22 = sadd.s32 4294967294, %s998_s20   ;;  %s998_s20 = sphi %s1043_s20, %s23_s20   ;;  %s994_s19 = sphi %s1041_s19, %s1354_s19   ;;  %s990_s18 = sphi %s1039_s18, %s1353_s18   ;;  %s986_s17 = sphi %s1037_s17, %s1352_s17   ;;  %s982_s16 = sphi %s1035_s16, %s1351_s16   ;;  %s978_s15 = sphi %s1033_s15, %s1350_s15  }
   0xc   : > { %p55_p0 = scmp.ne.s32.totalorder %s982_s16, %s978_s15  ;;  %p1320_p1 = scmp.eq.s32.totalorder %s1064_s21, 0 }
   0xd   : > { %p157_p3 = scmp.eq.s32.totalorder %s612_s22, 1  ;;  %p613_p5 = scmp.ge.s32.totalorder %s998_s20, 1 }
   0xe   : > { %p1073_p4 = por %p1320_p1, %p55_p0  ;;  %p164_p7 = scmp.lt.s32.totalorder %s998_s20, 3 }
   0xf   : > { %p1078_p6 = por %p157_p3, %p55_p0  ;;  %s1000_s26 = smov [#allocation7]  }
  0x10   : > { %s1330_s23 = scalar_select %p1073_p4, 1, 0 }
  0x11   : > { %s1331_s24 = scalar_select %p1078_p6, 1, 0 }
  0x12   : > { %p1083_p8 = pnand %p613_p5, %p164_p7  ;;  %s176_s27 = sshll.u32 %s1000_s26, 4  ;;  %s177_s27 = int_to_ptr.vmem [resolvable:$true] %s176_s27 }
  0x13   : > { %s35_s29 = sadd.s32 1, %s994_s19  ;;  %s1334_s2 = sld [smem:[#allocation15_spill]] }
  0x14   : > { %s1332_s25 = scalar_select %p1083_p8, 1, 0 }
  0x15   : > { %p748_p9 = pneg %p1083_p8 }
  0x17   : > { %p1092_p11 = pnand %p748_p9, %p1320_p1 }
  0x19   : > { %s820_s6 = scalar_lea.hbm %s1334_s2, 2048  ;;  %p822_p13 = pneg %p1092_p11 }
  0x1a   : > { %p821_p12 = scmp.ne.s32.totalorder %s1334_s2, %s820_s6  ;;  %p827_p5 = scmp.lt.u32.totalorder %s820_s6, %s1334_s2 }
  0x1c   : > { %p823_p0 = pnand %p822_p13, %p821_p12 }
  0x1e   : > { %p824_p3 = pneg %p823_p0 }
  0x20   : > { %p829_p7 = pnand %p827_p5, %p824_p3 }
  0x22   : > { %832 = shalt.err (!%p829_p7)
}
  0x23   : > { %s833_s11 = scalar_lea.vmem %s177_s27, 2048  ;;  %p841_p2 = scmp.lt.s32.totalorder %s177_s27, %s177_s27 }
  0x24   : > { %p834_p9 = scmp.ne.s32.totalorder %s177_s27, %s833_s11  ;;  %p842_p6 = scmp.lt.s32.totalorder %s833_s11, %s833_s11 }
  0x26   : > { %p836_p10 = pnand %p834_p9, %p822_p13  ;;  %p843_p4 = por %p842_p6, %p841_p2 }
  0x28   : > { %p837_p1 = pneg %p836_p10 }
  0x2a   : > { %p844_p8 = pnand %p843_p4, %p837_p1 }
  0x2c   : > { %847 = shalt.err (!%p844_p8)
}
  0x2d   : > { %s1323_s12 = smov 128   ;;  %s1325_s13 = smov 8  }
  0x2e   : > { %751 = dma.hbm_to_vmem [thread:$0]  (!%p1092_p11), %s1334_s2, 2048, %s177_s27, [#allocation6], %s1323_s12, %s1323_s12, %s1325_s13  }
  0x2f   : > { %p37_p1 = scmp.ge.s32.totalorder %s35_s29, 2  ;;  %s42_s26 = sadd.s32 1, %s986_s17 }
  0x30   : > { %p49_p2 = scmp.ne.s32.totalorder %s986_s17, %s982_s16  ;;  %p50_p4 = scmp.eq.s32.totalorder %s998_s20, 0 }
  0x31   : > { %s1356_s29 = smov (%p37_p1, %s35_s29), 0  ;;  %p1337_p8 = scmp.eq.s32.totalorder %s1064_s21, 1 }
  0x32   : > { %1335 = sst [smem:[#allocation13_spill]] %s1356_s29  ;;  %p1122_p6 = por %p50_p4, %p49_p2 }
  0x33   : > { %p1128_p10 = por %p1337_p8, %p49_p2  ;;  %s39_s5 = ssub.s32 %s994_s19, %s1356_s29 }
  0x34   : > { %p764_p12 = scmp.lt.s32.totalorder %s998_s20, 2  ;;  %p40_p11 = scmp.eq.s32.totalorder %s39_s5, 0 }
  0x35   : > { %s193_s27 = sand.u32 1, %s986_s17   ;;  %s635_s8 = sshll.u32 %s994_s19, 8 }
  0x36   : > { %s616_s6 = sshll.u32 %s193_s27, 4  ;;  %s1339_s0 = sld [smem:[#allocation14_spill]] }
  0x37   : > { %s1137_s7 = scalar_select %p40_p11, %s986_s17, %s42_s26  }
  0x38   : > { %s197_s14 = scalar_lea.vmem [#allocation2], %s616_s6  ;;  %p1149_p13 = pnand %p764_p12, %p1122_p6 }
  0x39   : > { %s204_s22 = sshll.u32 %s197_s14, 4  ;;  %s1156_s9 = scalar_lea.hbm %s1316_s1, %s635_s8  ;;  %s1145_s22 = int_to_ptr.vmem [resolvable:$true] %s204_s22 }
  0x3a   : > { %s218_s10 = scalar_lea.vmem [#allocation5], %s616_s6  ;;  %s1160_s2 = scalar_lea.sflag [#allocation3], %s193_s27 }
  0x3b   : > { %s1158_s13 = sshll.u32 %s218_s10, 4  ;;  %p850_p3 = pneg %p1149_p13  ;;  %s1192_s13 = int_to_ptr.vmem [resolvable:$true] %s1158_s13 }
  0x3c   : > { %s1143_s11 = scalar_lea.hbm %s1339_s0, %s635_s8  ;;  %s853_s12 = scalar_lea.hbm %s1339_s0, 512 }
  0x3d   : > { %s848_s14 = scalar_lea.hbm %s1143_s11, 256  ;;  %p854_p9 = scmp.lt.u32.totalorder %s1143_s11, %s1339_s0 }
  0x3e   : > { %p849_p0 = scmp.ne.s32.totalorder %s1143_s11, %s848_s14  ;;  %p855_p1 = scmp.lt.u32.totalorder %s853_s12, %s848_s14 }
  0x3f   : > { %p857_p4 = scmp.lt.u32.totalorder %s848_s14, %s1143_s11 }
  0x40   : > { %p851_p5 = pnand %p850_p3, %p849_p0  ;;  %p856_p2 = por %p855_p1, %p854_p9 }
  0x42   : > { %p852_p7 = pneg %p851_p5  ;;  %p858_p6 = por %p857_p4, %p856_p2 }
  0x44   : > { %p859_p8 = pnand %p858_p6, %p852_p7 }
  0x46   : > { %862 = shalt.err (!%p859_p8)
}
  0x47   : > { %s863_s27 = scalar_lea.vmem %s1145_s22, 256  ;;  %s1003_s29 = smov [#allocation2]  }
  0x48   : > { %p864_p12 = scmp.ne.s32.totalorder %s1145_s22, %s863_s27  ;;  %s868_s6 = sshll.u32 %s1003_s29, 4  ;;  %s869_s6 = int_to_ptr.vmem [resolvable:$false] %s868_s6 }
  0x49   : > { %s870_s10 = scalar_lea.vmem %s869_s6, 512  ;;  %p871_p5 = scmp.lt.s32.totalorder %s1145_s22, %s869_s6 }
  0x4a   : > { %p866_p11 = pnand %p864_p12, %p850_p3  ;;  %p872_p9 = scmp.lt.s32.totalorder %s870_s10, %s863_s27 }
  0x4c   : > { %p867_p0 = pneg %p866_p11  ;;  %p873_p1 = por %p872_p9, %p871_p5 }
  0x4e   : > { %p874_p2 = pnand %p873_p1, %p867_p0 }
  0x50   : > { %877 = shalt.err (!%p874_p2)
}
  0x51   : > { %s1341_s14 = smov 8   ;;  %s1342_s30 = smov 128  }
  0x52   : > { %755 = dma.hbm_to_vmem [thread:$0]  (!%p1149_p13), %s1143_s11, 256, %s1145_s22, %s1160_s2, %s1342_s30, %s1342_s30, %s1341_s14  }
  0x53   : > { %s214_s12 = sand.u32 1, %s998_s20   ;;  %s878_s8 = scalar_lea.hbm %s1156_s9, 256 }
  0x54   : > { %s1195_s26 = scalar_lea.sflag [#allocation6], %s214_s12  ;;  %p879_p7 = scmp.ne.s32.totalorder %s1156_s9, %s878_s8 }
  0x55   : > { %s883_s6 = scalar_lea.hbm %s1316_s1, 512  ;;  %p884_p8 = scmp.lt.u32.totalorder %s1156_s9, %s1316_s1 }
  0x56   : > { %p881_p4 = pnand %p879_p7, %p850_p3  ;;  %p885_p12 = scmp.lt.u32.totalorder %s883_s6, %s878_s8 }
  0x57   : > { %p887_p0 = scmp.lt.u32.totalorder %s878_s8, %s1156_s9 }
  0x58   : > { %p882_p6 = pneg %p881_p4  ;;  %p886_p11 = por %p885_p12, %p884_p8 }
  0x5a   : > { %p888_p5 = por %p887_p0, %p886_p11 }
  0x5c   : > { %p889_p9 = pnand %p888_p5, %p882_p6 }
  0x5e   : > { %892 = shalt.err (!%p889_p9)
}
  0x5f   : > { %s893_s2 = scalar_lea.vmem %s1192_s13, 256  ;;  %s1004_s11 = smov [#allocation5]  }
  0x60   : > { %p894_p1 = scmp.ne.s32.totalorder %s1192_s13, %s893_s2  ;;  %s898_s22 = sshll.u32 %s1004_s11, 4  ;;  %s899_s22 = int_to_ptr.vmem [resolvable:$false] %s898_s22 }
  0x61   : > { %s900_s0 = scalar_lea.vmem %s899_s22, 512  ;;  %p901_p4 = scmp.lt.s32.totalorder %s1192_s13, %s899_s22 }
  0x62   : > { %p896_p2 = pnand %p894_p1, %p850_p3  ;;  %p902_p8 = scmp.lt.s32.totalorder %s900_s0, %s893_s2 }
  0x64   : > { %p897_p7 = pneg %p896_p2  ;;  %p903_p12 = por %p902_p8, %p901_p4 }
  0x66   : > { %p904_p11 = pnand %p903_p12, %p897_p7 }
  0x68   : > { %907 = shalt.err (!%p904_p11)
}
  0x69   : > { %758 = dma.hbm_to_vmem [thread:$0]  (!%p1149_p13), %s1156_s9, 256, %s1192_s13, %s1195_s26, %s1342_s30, %s1342_s30, %s1341_s14  }
  0x6a   : > { %p1343_p3 = scmp.ne.s32.totalorder %s1332_s25, 0 }
  0x6b   : > { %s1227_s12 = sand.u32 (!%p1343_p3), 1, %s982_s16   ;;  %p1344_p6 = scmp.ne.s32.totalorder (!%p1343_p3), %s1330_s23, 0 }
  0x6c   : > { %239 = sbr.rel (%p1343_p3) target bundleno = 606 (0x25e), region = 36  ;;  %s1230_s8 = sshll.u32 (!%p1343_p3), %s1227_s12, 4 }
  0x6d   : > { %s242_s5 = scalar_lea.sflag (!%p1343_p3), [#allocation3], %s1227_s12  ;;  %s245_s27 = scalar_lea.vmem (!%p1343_p3), [#allocation2], %s1230_s8 }
  0x73   : > { %961 = dma.done.wait (%p1344_p6), %s242_s5, 256  }
  0x74   : > { %963 = vsyncadd (%p1344_p6), %s242_s5, 4294967040  ;;  %s250_s25 = sand.u32 1, %s1064_s21   ;;  %s254_s9 = scalar_lea.vmem [#allocation5], %s1230_s8 }
  0x75   : > { %s251_s13 = scalar_lea.sflag [#allocation6], %s250_s25 }
  0x76   : > { %965 = dma.done.wait (%p1344_p6), %s251_s13, 256  }
  0x77   : > { %967 = vsyncadd (%p1344_p6), %s251_s13, 4294967040  ;;  %p1345_p13 = scmp.eq.s32.totalorder %s1064_s21, 0 }
  0x79   : > { %969 = dma.done.wait (%p1345_p13), [#allocation6], 2048   ;;  %p1346_p0 = pmov %p1345_p13 }
  0x7a   : > { %v292_v0 = vld [vmem:[#allocation7] sm:$0xff]  ;;  %v293_v1 = vld [vmem:[#allocation7 + $0x8] sm:$0xff]  ;;  %v294_v2 = vld [vmem:[#allocation7 + $0x10] sm:$0xff]  ;;  %vm392_vm0 = vcmask 130048   ;;  %s287_s21 = scalar_lea.vmem [#allocation8], %s1230_s8  ;;  %s637_s26 = sshll.u32 %s990_s18, 8 }
  0x7b   : > { %971 = vsyncadd (%p1346_p0), [#allocation6], 4294965248  ;;  %v702_v3 = vpack.c.bf16 %v293_v1, %v292_v0  ;;  %v295_v4 = vld [vmem:[#allocation7 + $0x18] sm:$0xff]  ;;  %v296_v6 = vld [vmem:[#allocation7 + $0x20] sm:$0xff]  ;;  %s492_s23 = sshll.u32 %s287_s21, 4  ;;  %s1266_s10 = scalar_lea.hbm %s1319_s4, %s637_s26  ;;  %s1261_s23 = int_to_ptr.vmem [resolvable:$true] %s492_s23 }
  0x7c   : > { %v706_v5 = vpack.c.bf16 %v295_v4, %v294_v2  ;;  %v297_v7 = vld [vmem:[#allocation7 + $0x28] sm:$0xff]  ;;  %v290_v9 = vld [vmem:[%s245_s27] sm:$0xff]  ;;  %v299_v11 = vld [vmem:[#allocation7 + $0x38] sm:$0xff]  ;;  %s477_s2 = scalar_lea.sflag [#allocation4], %s1227_s12  ;;  %s908_s11 = scalar_lea.vmem %s1261_s23, 256 }
  0x7d   : > { %703 = vmatprep.subr.bf16.mxu0 %v702_v3  ;;  %v710_v8 = vpack.c.bf16 %v297_v7, %v296_v6  ;;  %v298_v10 = vld [vmem:[#allocation7 + $0x30] sm:$0xff]  ;;  %692 = vmatprep.mubr.f32.mxu0 %v290_v9  ;;  %v300_v13 = vld [vmem:[#allocation7 + $0x40] sm:$0xff]  ;;  %v301_v14 = vld [vmem:[#allocation7 + $0x48] sm:$0xff]  ;;  %p909_p5 = scmp.ne.s32.totalorder %s1261_s23, %s908_s11  ;;  %s1005_s18 = smov [#allocation8]  }
  0x7e   : > { %705 = vmatpush3.bf16.msra.mxu0 %v702_v3  ;;  %v714_v12 = vpack.c.bf16 %v299_v11, %v298_v10  ;;  %v718_v15 = vpack.c.bf16 %v301_v14, %v300_v13  ;;  %v302_v16 = vld [vmem:[#allocation7 + $0x50] sm:$0xff]  ;;  %v303_v17 = vld [vmem:[#allocation7 + $0x58] sm:$0xff]  ;;  %v304_v19 = vld [vmem:[#allocation7 + $0x60] sm:$0xff]  ;;  %s912_s22 = sshll.u32 %s1005_s18, 4  ;;  %s913_s22 = int_to_ptr.vmem [resolvable:$false] %s912_s22 }
  0x7f   : > { %707 = vmatprep.subr.bf16.mxu0 %v706_v5  ;;  %v722_v18 = vpack.c.bf16 %v303_v17, %v302_v16  ;;  %v305_v20 = vld [vmem:[#allocation7 + $0x68] sm:$0xff]  ;;  %v306_v22 = vld [vmem:[#allocation7 + $0x70] sm:$0xff]  ;;  %v307_v23 = vld [vmem:[#allocation7 + $0x78] sm:$0xff]  ;;  %p910_p9 = pnand %p909_p5, %p1128_p10  ;;  %s914_s0 = scalar_lea.vmem %s913_s22, 512 }
  0x80   : > { %v726_v21 = vpack.c.bf16 %v305_v20, %v304_v19  ;;  %v730_v24 = vpack.c.bf16 %v307_v23, %v306_v22  ;;  %v291_v25 = vld [vmem:[%s245_s27 + $0x8] sm:$0xff]  ;;  %v383_v26 = vld [vmem:[%s254_s9] sm:$0xff]  ;;  %p915_p2 = scmp.lt.s32.totalorder %s1261_s23, %s913_s22  ;;  %p916_p7 = scmp.lt.s32.totalorder %s914_s0, %s908_s11 }
  0x81   : > { %699 = vmatprep.mubr.msk.f32.mxu1 %vm392_vm0, %v383_v26  ;;  %v384_v30 = vld [vmem:[%s254_s9 + $0x8] sm:$0xff]  ;;  %v627_v31 = vld [vmem:[%s1318_s3] ss:$0 sm:$0xff]  ;;  %p911_p1 = pneg %p910_p9 }
  0x82   : > { %709 = vmatpush3.bf16.msra.mxu0 %v706_v5  ;;  %p917_p4 = por %p916_p7, %p915_p2 }
  0x83   : > { %711 = vmatprep.subr.bf16.mxu0 %v710_v8 }
  0x84   : > { %p918_p8 = pnand %p917_p4, %p911_p1 }
  0x86   : > { %713 = vmatpush3.bf16.msra.mxu0 %v710_v8 }
  0x87   : > { %715 = vmatprep.subr.bf16.mxu0 %v714_v12 }
  0x8a   : > { %717 = vmatpush3.bf16.msra.mxu0 %v714_v12 }
  0x8b   : > { %719 = vmatprep.subr.bf16.mxu0 %v718_v15 }
  0x8e   : > { %721 = vmatpush3.bf16.msra.mxu0 %v718_v15 }
  0x8f   : > { %723 = vmatprep.subr.bf16.mxu0 %v722_v18 }
  0x92   : > { %725 = vmatpush3.bf16.msra.mxu0 %v722_v18 }
  0x93   : > { %727 = vmatprep.subr.bf16.mxu0 %v726_v21 }
  0x96   : > { %729 = vmatpush3.bf16.msra.mxu0 %v726_v21 }
  0x97   : > { %731 = vmatprep.subr.bf16.mxu0 %v730_v24 }
  0x9a   : > { %733 = vmatpush3.bf16.msra.mxu0 %v730_v24 }
  0x9d   : > { %693 = vmatmul.mubr.f32.vlgmr.msra.gmra.mrb[0].mxu0 %v291_v25 }
 0x170   : > { %v694_v27 = vpop.f32.mrb[0].mxu0 }
 0x171   : > { %v374_v28 = vpop.f32.mrb[1].mxu0 }
 0x172   : > { %v734_v29 = vpack.c.bf16 %v694_v27, %v374_v28 }
 0x174   : > { %735 = vmatprep.subr.bf16.mxu1 %v734_v29 }
 0x175   : > { %737 = vmatpush3.bf16.msra.mxu1 %v734_v29 }
 0x178   : > { %700 = vmatmul.mubr.msk.f32.vlgmr.msra.gmra.mrb[0].mxu1 %vm392_vm0, %v384_v30 }
 0x24b   : > { %v701_v32 = vpop.f32.mrb[0].mxu1 }
 0x24c   : > { %v471_v33 = vadd.f32 %v701_v32, %v627_v31  ;;  %v465_v34 = vpop.f32.mrb[1].mxu1 }
 0x24d   : > { %v466_v35 = vadd.f32 %v627_v31, %v465_v34 }
 0x24e   : > { %475 = vst [vmem:[%s287_s21 + $0x8] sm:$0xff] %v471_v33 }
 0x24f   : > { %474 = vst [vmem:[%s287_s21] sm:$0xff] %v466_v35 }
 0x250   : > { %921 = shalt.err (!%p918_p8)
}
 0x251   : > { %s922_s8 = scalar_lea.hbm %s1266_s10, 256  ;;  %s926_s25 = scalar_lea.hbm %s1319_s4, 512 }
 0x252   : > { %p923_p12 = scmp.ne.s32.totalorder %s1266_s10, %s922_s8  ;;  %p927_p6 = scmp.lt.u32.totalorder %s1266_s10, %s1319_s4 }
 0x253   : > { %p928_p13 = scmp.lt.u32.totalorder %s926_s25, %s922_s8  ;;  %p930_p5 = scmp.lt.u32.totalorder %s922_s8, %s1266_s10 }
 0x254   : > { %p924_p11 = pnand %p923_p12, %p1128_p10 }
 0x255   : > { %p929_p0 = por %p928_p13, %p927_p6 }
 0x256   : > { %p925_p3 = pneg %p924_p11 }
 0x257   : > { %p931_p9 = por %p930_p5, %p929_p0 }
 0x259   : > { %p932_p1 = pnand %p931_p9, %p925_p3 }
 0x25b   : > { %935 = shalt.err (!%p932_p1)
}
 0x25c   : > { %s1006_s21 = smov 128   ;;  %s1007_s14 = smov 8  }
 0x25d   : > { %746 = dma.vmem_to_hbm [thread:$0]  (%p1128_p10), %s1261_s23, 256, %s1266_s10, %s477_s2, %s1006_s21, %s1006_s21, %s1007_s14  }
 0x25e PF: > { %s507_s30 = sand.u32 1, %s978_s15   ;;  %p1347_p2 = scmp.ne.s32.totalorder %s1331_s24, 0 }
 0x25f   : > { %p1348_p7 = scmp.ge.s32.totalorder %s998_s20, 2  ;;  %s508_s26 = scalar_lea.sflag [#allocation4], %s507_s30 }
 0x261   : > { %p760_p4 = pnand %p1348_p7, %p1347_p2 }
 0x263   : > { %973 = dma.done.wait (!%p760_p4), %s508_s26, 256  }
 0x264   : > { %975 = vsyncadd (!%p760_p4), %s508_s26, 4294967040  ;;  %s23_s20 = sadd.s32 1, %s998_s20   ;;  %s1349_s28 = sld [smem:[#allocation13_spill]] }
 0x265   : > { %p20_p8 = scmp.ge.s32.totalorder %s23_s20, 4   ;;  %s1350_s15 = smov %s982_s16 }
 0x266   : > { %s1351_s16 = smov %s986_s17  ;;  %s1352_s17 = smov %s1137_s7 }
 0x267   : > { %s1353_s18 = smov %s994_s19  ;;  %22 = sbr.rel (!%p20_p8) target bundleno = 11 (0xb), region = 98 }
 0x26a   : > { %s1354_s19 = smov %s1349_s28 }
 0x26e   :  { %513 = vsyncpa [#allocation3], 1 }
 0x26f   :  { %515 = vsyncpa [#allocation3 + $0x1], 1 }
 0x270   :  { %516 = vsyncpa [#allocation6], 1 }
 0x271   :  { %518 = vsyncpa [#allocation6 + $0x1], 1 }
 0x272   :  { %519 = vsyncpa [#allocation4], 1 }
 0x273   :  { %521 = vsyncpa [#allocation4 + $0x1], 1 }

</bundles_post_ra>
